<compile_context>
chip_gen: v5e
topology: v5e:2x2
jax: 0.10.0
libtpu: 0.0.40
codegen_flags: <defaults>
</compile_context>

<pallas_src>
import functools

import jax
import jax.numpy as jnp
from jax.experimental import pallas as pl
from jax.experimental.pallas import tpu as pltpu


def _round_up(x, m):
    return (x + m - 1) // m * m


def dqn_kernel(x_ref, w1_ref, b1_ref, w2_ref, b2_ref, w3_ref, b3_ref, out_ref):
    """Fused 3-layer MLP on one (eff_tile, n_obs) batch tile.

    Weights may be f32 or bf16; activations are cast to the weight dtype for the MXU,
    accumulation is always f32, bias add + ReLU stay f32.
    """
    wdt = w1_ref.dtype
    x = x_ref[...].astype(wdt)
    h1 = jnp.dot(x, w1_ref[...], preferred_element_type=jnp.float32) + b1_ref[...]
    h1 = jnp.maximum(h1, 0.0)
    h2 = jnp.dot(h1.astype(wdt), w2_ref[...], preferred_element_type=jnp.float32) + b2_ref[...]
    h2 = jnp.maximum(h2, 0.0)
    out = jnp.dot(h2.astype(wdt), w3_ref[...], preferred_element_type=jnp.float32) + b3_ref[...]
    out_ref[...] = out.astype(out_ref.dtype)


@functools.partial(jax.jit, static_argnames=("action_space", "tile_cap"))
def dqnetwork_forward(state, params, *, action_space, tile_cap=4096):
    """state: [B, n_observations] f32.

    params (from init_params): w{1,2,3}: [in, out] (bf16 or f32), b{1,2,3}: [1, out] f32;
    w3/b3 already lane-padded to a multiple of 128 at init.
    Returns [B, action_space] f32 Q-values.
    """
    B, n_obs = state.shape
    fc1 = params["w1"].shape[1]
    fc2 = params["w2"].shape[1]
    out_pad = params["w3"].shape[1]  # lane-padded at init (>= action_space)

    # --- batch tiling ---------------------------------------------------------------
    # Small / typical batches: one full-dim block (legal for ANY B, incl. B=2 or odd B),
    # so no batch padding and exactly one grid step.
    # Large batches (>= 2048 rows): exactly 2 parallel tiles so v7x's 2 TensorCores both
    # get work; tile size still capped at tile_cap to bound VMEM.
    B8 = _round_up(max(B, 1), 8)
    num_tiles = 2 if B8 >= 2048 else 1
    if num_tiles == 1 and B8 <= tile_cap:
        eff_tile, B_pad = B, B  # full-dim block: no pad, single step
    else:
        eff_tile = min(_round_up(pl.cdiv(B8, num_tiles), 8), tile_cap)
        B_pad = _round_up(B, eff_tile)
    if B_pad != B:
        # Fallback only (multi-tile, batch not a multiple of the tile).
        state = jnp.pad(state, ((0, B_pad - B), (0, 0)))
    grid = (B_pad // eff_tile,)

    resident = lambda i: (0, 0)  # constant block index: DMA'd once, VMEM-resident

    w_bytes = sum(int(v.size) * v.dtype.itemsize for v in params.values())
    cost = pl.CostEstimate(
        flops=2 * B_pad * (n_obs * fc1 + fc1 * fc2 + fc2 * out_pad),
        transcendentals=0,
        bytes_accessed=int(state.size) * state.dtype.itemsize + w_bytes + B_pad * out_pad * 4,
    )

    out = pl.pallas_call(
        dqn_kernel,
        out_shape=jax.ShapeDtypeStruct((B_pad, out_pad), jnp.float32),
        grid=grid,
        in_specs=[
            pl.BlockSpec((eff_tile, n_obs), lambda i: (i, 0)),   # x: tiled over batch
            pl.BlockSpec(params["w1"].shape, resident),
            pl.BlockSpec(params["b1"].shape, resident),
            pl.BlockSpec(params["w2"].shape, resident),
            pl.BlockSpec(params["b2"].shape, resident),
            pl.BlockSpec(params["w3"].shape, resident),
            pl.BlockSpec(params["b3"].shape, resident),
        ],
        out_specs=pl.BlockSpec((eff_tile, out_pad), lambda i: (i, 0)),
        compiler_params=pltpu.CompilerParams(
            dimension_semantics=("parallel",),   # shard batch tiles across TCs on v7x
            vmem_limit_bytes=32 * 1024 * 1024,   # within scoped defaults; v7x-safe headroom
        ),
        cost_estimate=cost,
    )(state, params["w1"], params["b1"], params["w2"], params["b2"],
      params["w3"], params["b3"])

    if B_pad != B or out_pad != action_space:
        out = out[:B, :action_space]
    return out


def init_params(key, n_observations, fc1_dim, fc2_dim, action_space,
                weight_dtype=jnp.bfloat16):
    """Deterministic init mimicking nn.Linear default (uniform +-1/sqrt(fan_in)).

    Weights stored [in, out] (transpose of PyTorch) so the hot path is x @ W on the MXU.
    fc3's weight/bias are lane-padded to a multiple of 128 HERE (not per forward call).
    Biases always kept f32 (epilogue runs in f32). Weights default to bf16 (MXU-native on
    all generations; f32 accumulation preserves accuracy).
    """
    ks = jax.random.split(key, 6)

    def linear(kw, kb, fan_in, fan_out, pad_out_to=None):
        bound = 1.0 / float(fan_in) ** 0.5
        w = jax.random.uniform(kw, (fan_in, fan_out), jnp.float32, -bound, bound)
        b = jax.random.uniform(kb, (1, fan_out), jnp.float32, -bound, bound)
        if pad_out_to is not None and pad_out_to != fan_out:
            w = jnp.pad(w, ((0, 0), (0, pad_out_to - fan_out)))
            b = jnp.pad(b, ((0, 0), (0, pad_out_to - fan_out)))
        return w.astype(weight_dtype), b

    w1, b1 = linear(ks[0], ks[1], n_observations, fc1_dim)
    w2, b2 = linear(ks[2], ks[3], fc1_dim, fc2_dim)
    w3, b3 = linear(ks[4], ks[5], fc2_dim, action_space,
                    pad_out_to=_round_up(action_space, 128))
    return {"w1": w1, "b1": b1, "w2": w2, "b2": b2, "w3": w3, "b3": b3}


def ref_forward(x, p, action_space):
    """Pure-JAX reference of the same forward pass (always f32 math)."""
    f32 = jnp.float32
    h1 = jnp.maximum(x @ p["w1"].astype(f32) + p["b1"], 0.0)
    h2 = jnp.maximum(h1 @ p["w2"].astype(f32) + p["b2"], 0.0)
    out = h2 @ p["w3"].astype(f32) + p["b3"]
    return out[:, :action_space]


if __name__ == "__main__":
    n_observations, fc1_dim, fc2_dim, action_space = 8, 32, 32, 4
    key = jax.random.PRNGKey(0)
    k_s0, k_s1, k_s2, k_params = jax.random.split(key, 4)

    # bf16-weight params (default fast path) and an f32-weight variant.
    params = init_params(k_params, n_observations, fc1_dim, fc2_dim, action_space)
    params_f32 = init_params(k_params, n_observations, fc1_dim, fc2_dim, action_space,
                             weight_dtype=jnp.float32)

    # --- act() path: B=2, single full-dim block, no padding HLOs at all ---
    B = 2
    state = jax.random.normal(k_s0, (B, n_observations), jnp.float32)
    actions = dqnetwork_forward(state, params, action_space=action_space)
    jax.block_until_ready(actions)
    expected = ref_forward(state, params, action_space)
    assert actions.shape == (B, action_space)
    assert jnp.allclose(actions, expected, atol=5e-2, rtol=5e-2)

    # --- replay-buffer batch: B=512 runs in ONE grid step now ---
    B_mid = 512
    state_mid = jax.random.normal(k_s1, (B_mid, n_observations), jnp.float32)
    actions_mid = dqnetwork_forward(state_mid, params, action_space=action_space)
    jax.block_until_ready(actions_mid)
    expected_mid = ref_forward(state_mid, params, action_space)
    assert actions_mid.shape == (B_mid, action_space)
    assert jnp.allclose(actions_mid, expected_mid, atol=5e-2, rtol=5e-2)

    # --- large batch: B=2048 -> exactly 2 parallel tiles (feeds both TCs on v7x) ---
    B_big = 2048
    state_big = jax.random.normal(k_s2, (B_big, n_observations), jnp.float32)
    actions_big = dqnetwork_forward(state_big, params, action_space=action_space)
    jax.block_until_ready(actions_big)
    expected_big = ref_forward(state_big, params, action_space)
    assert actions_big.shape == (B_big, action_space)
    assert jnp.allclose(actions_big, expected_big, atol=5e-2, rtol=5e-2)

    # --- f32-weight path (PyTorch-default dtype), tight tolerance ---
    actions_f32 = dqnetwork_forward(state_mid, params_f32, action_space=action_space)
    jax.block_until_ready(actions_f32)
    expected_f32 = ref_forward(state_mid, params_f32, action_space)
    assert jnp.allclose(actions_f32, expected_f32, atol=1e-4, rtol=1e-4)

    print("KERNEL_OK")
</pallas_src>

<mosaic_0001>
module attributes {stable_mosaic.version = 11 : i64} {
  func.func @dqn_kernel(%arg0: i32, %arg1: memref<2x8xf32, #tpu.memory_space<vmem>>, %arg2: memref<8x32xbf16, #tpu.memory_space<vmem>>, %arg3: memref<1x32xf32, #tpu.memory_space<vmem>>, %arg4: memref<32x32xbf16, #tpu.memory_space<vmem>>, %arg5: memref<1x32xf32, #tpu.memory_space<vmem>>, %arg6: memref<32x128xbf16, #tpu.memory_space<vmem>>, %arg7: memref<1x128xf32, #tpu.memory_space<vmem>>, %arg8: memref<2x128xf32, #tpu.memory_space<vmem>>) attributes {dimension_semantics = [#tpu.dimension_semantics<parallel>], iteration_bounds = array<i64: 1>, scalar_prefetch = 0 : i64, scratch_operands = 0 : i64, tpu.core_type = #tpu.core_type<tc>, window_params = [{transform_indices = @transform_0, window_bounds = array<i64: 2, 8>}, {pipeline_mode = #tpu.pipeline_mode<synchronous>, transform_indices = @transform_1, window_bounds = array<i64: 8, 32>}, {pipeline_mode = #tpu.pipeline_mode<synchronous>, transform_indices = @transform_2, window_bounds = array<i64: 1, 32>}, {pipeline_mode = #tpu.pipeline_mode<synchronous>, transform_indices = @transform_3, window_bounds = array<i64: 32, 32>}, {pipeline_mode = #tpu.pipeline_mode<synchronous>, transform_indices = @transform_4, window_bounds = array<i64: 1, 32>}, {pipeline_mode = #tpu.pipeline_mode<synchronous>, transform_indices = @transform_5, window_bounds = array<i64: 32, 128>}, {pipeline_mode = #tpu.pipeline_mode<synchronous>, transform_indices = @transform_6, window_bounds = array<i64: 1, 128>}, {transform_indices = @transform_7, window_bounds = array<i64: 2, 128>}]} {
    %c0 = arith.constant 0 : index
    %c0_0 = arith.constant 0 : index
    %0 = vector.load %arg1[%c0, %c0_0] : memref<2x8xf32, #tpu.memory_space<vmem>>, vector<2x8xf32>
    %1 = arith.truncf %0 : vector<2x8xf32> to vector<2x8xbf16>
    %c0_1 = arith.constant 0 : index
    %c0_2 = arith.constant 0 : index
    %2 = vector.load %arg2[%c0_1, %c0_2] : memref<8x32xbf16, #tpu.memory_space<vmem>>, vector<8x32xbf16>
    %cst = arith.constant dense<0.000000e+00> : vector<2x32xf32>
    %3 = tpu.matmul %1, %2, %cst {dimension_numbers = #tpu.dot_dimension_numbers<[1], [0], [0], [1], [0, 0, 1, 1], [], []>} : vector<2x8xbf16>, vector<8x32xbf16>, vector<2x32xf32> -> vector<2x32xf32>
    %c0_3 = arith.constant 0 : index
    %c0_4 = arith.constant 0 : index
    %4 = vector.load %arg3[%c0_3, %c0_4] : memref<1x32xf32, #tpu.memory_space<vmem>>, vector<1x32xf32>
    %5 = vector.broadcast %4 : vector<1x32xf32> to vector<2x32xf32>
    %6 = arith.addf %3, %5 : vector<2x32xf32>
    %cst_5 = arith.constant 0.000000e+00 : f32
    %7 = vector.broadcast %cst_5 : f32 to vector<2x32xf32>
    %8 = arith.maximumf %6, %7 : vector<2x32xf32>
    %9 = arith.truncf %8 : vector<2x32xf32> to vector<2x32xbf16>
    %c0_6 = arith.constant 0 : index
    %c0_7 = arith.constant 0 : index
    %10 = vector.load %arg4[%c0_6, %c0_7] : memref<32x32xbf16, #tpu.memory_space<vmem>>, vector<32x32xbf16>
    %cst_8 = arith.constant dense<0.000000e+00> : vector<2x32xf32>
    %11 = tpu.matmul %9, %10, %cst_8 {dimension_numbers = #tpu.dot_dimension_numbers<[1], [0], [0], [1], [0, 0, 1, 1], [], []>} : vector<2x32xbf16>, vector<32x32xbf16>, vector<2x32xf32> -> vector<2x32xf32>
    %c0_9 = arith.constant 0 : index
    %c0_10 = arith.constant 0 : index
    %12 = vector.load %arg5[%c0_9, %c0_10] : memref<1x32xf32, #tpu.memory_space<vmem>>, vector<1x32xf32>
    %13 = vector.broadcast %12 : vector<1x32xf32> to vector<2x32xf32>
    %14 = arith.addf %11, %13 : vector<2x32xf32>
    %cst_11 = arith.constant 0.000000e+00 : f32
    %15 = vector.broadcast %cst_11 : f32 to vector<2x32xf32>
    %16 = arith.maximumf %14, %15 : vector<2x32xf32>
    %17 = arith.truncf %16 : vector<2x32xf32> to vector<2x32xbf16>
    %c0_12 = arith.constant 0 : index
    %c0_13 = arith.constant 0 : index
    %18 = vector.load %arg6[%c0_12, %c0_13] : memref<32x128xbf16, #tpu.memory_space<vmem>>, vector<32x128xbf16>
    %cst_14 = arith.constant dense<0.000000e+00> : vector<2x128xf32>
    %19 = tpu.matmul %17, %18, %cst_14 {dimension_numbers = #tpu.dot_dimension_numbers<[1], [0], [0], [1], [0, 0, 1, 1], [], []>} : vector<2x32xbf16>, vector<32x128xbf16>, vector<2x128xf32> -> vector<2x128xf32>
    %c0_15 = arith.constant 0 : index
    %c0_16 = arith.constant 0 : index
    %20 = vector.load %arg7[%c0_15, %c0_16] : memref<1x128xf32, #tpu.memory_space<vmem>>, vector<1x128xf32>
    %21 = vector.broadcast %20 : vector<1x128xf32> to vector<2x128xf32>
    %22 = arith.addf %19, %21 : vector<2x128xf32>
    %c0_17 = arith.constant 0 : index
    %c0_18 = arith.constant 0 : index
    %23 = vector.load %arg8[%c0_17, %c0_18] : memref<2x128xf32, #tpu.memory_space<vmem>>, vector<2x128xf32>
    tpu.vector_store %arg8[%c0_17, %c0_18], %22 {strides = array<i32>} : memref<2x128xf32, #tpu.memory_space<vmem>>, vector<2x128xf32>,
    return
  }
  func.func @transform_0(%arg0: i32) -> (i32, i32) {
    %c0_i32 = arith.constant 0 : i32
    %c0_i32_0 = arith.constant 0 : i32
    return %arg0, %c0_i32 : i32, i32
  }
  func.func @transform_1(%arg0: i32) -> (i32, i32) {
    %c0_i32 = arith.constant 0 : i32
    %c0_i32_0 = arith.constant 0 : i32
    %c0_i32_1 = arith.constant 0 : i32
    return %c0_i32, %c0_i32_0 : i32, i32
  }
  func.func @transform_2(%arg0: i32) -> (i32, i32) {
    %c0_i32 = arith.constant 0 : i32
    %c0_i32_0 = arith.constant 0 : i32
    %c0_i32_1 = arith.constant 0 : i32
    return %c0_i32, %c0_i32_0 : i32, i32
  }
  func.func @transform_3(%arg0: i32) -> (i32, i32) {
    %c0_i32 = arith.constant 0 : i32
    %c0_i32_0 = arith.constant 0 : i32
    %c0_i32_1 = arith.constant 0 : i32
    return %c0_i32, %c0_i32_0 : i32, i32
  }
  func.func @transform_4(%arg0: i32) -> (i32, i32) {
    %c0_i32 = arith.constant 0 : i32
    %c0_i32_0 = arith.constant 0 : i32
    %c0_i32_1 = arith.constant 0 : i32
    return %c0_i32, %c0_i32_0 : i32, i32
  }
  func.func @transform_5(%arg0: i32) -> (i32, i32) {
    %c0_i32 = arith.constant 0 : i32
    %c0_i32_0 = arith.constant 0 : i32
    %c0_i32_1 = arith.constant 0 : i32
    return %c0_i32, %c0_i32_0 : i32, i32
  }
  func.func @transform_6(%arg0: i32) -> (i32, i32) {
    %c0_i32 = arith.constant 0 : i32
    %c0_i32_0 = arith.constant 0 : i32
    %c0_i32_1 = arith.constant 0 : i32
    return %c0_i32, %c0_i32_0 : i32, i32
  }
  func.func @transform_7(%arg0: i32) -> (i32, i32) {
    %c0_i32 = arith.constant 0 : i32
    %c0_i32_0 = arith.constant 0 : i32
    return %arg0, %c0_i32 : i32, i32
  }
}

</mosaic_0001>

<bundles_post_ra>
// kernel: dqnetwork_forward.1
= control target key start
LH: loop header
LB: loop body
LE: loop exit
PB: predicated region body
PF: predicated region fallthrough
CT: control target
= control target key end

     0   :  { %12 = vsyncpa [#allocation3], 0  ;;  %s483_s0 = inlined_call_operand.hbm [shape: f32[2,8], index: 0, kind: input, shape index: {}]   ;;  %s484_s1 = inlined_call_operand.hbm [shape: bf16[8,32], index: 1, kind: input, shape index: {}]   ;;  %s485_s2 = inlined_call_operand.hbm [shape: f32[1,32], index: 2, kind: input, shape index: {}]   ;;  %s486_s3 = inlined_call_operand.hbm [shape: bf16[32,32], index: 3, kind: input, shape index: {}]   ;;  %s487_s4 = inlined_call_operand.vmem [shape: f32[1,32], index: 4, kind: input, shape index: {}]   ;;  %s488_s5 = inlined_call_operand.hbm [shape: bf16[32,128], index: 5, kind: input, shape index: {}]   ;;  %s489_s6 = inlined_call_operand.vmem [shape: f32[1,128], index: 6, kind: input, shape index: {}]   ;;  %s490_s7 = inlined_call_operand.hbm [shape: f32[2,128], index: 7, kind: output, shape index: {}]  }
   0x1   :  { %13 = vsyncpa [#allocation6], 0 }
   0x2   :  { %14 = vsyncpa [#allocation9], 0  ;;  %s32_s26 = sshll.u32 %s484_s1, 4  ;;  %s33_s26 = int_to_ptr.hbm [resolvable:$true] %s32_s26 }
   0x3   :  { %15 = vsyncpa [#allocation4], 0  ;;  %s411_s27 = smov [#allocation5]   ;;  %s53_s8 = sshll.u32 %s486_s3, 4  ;;  %s54_s8 = int_to_ptr.hbm [resolvable:$true] %s53_s8 }
   0x4   :  { %s34_s28 = sshll.u32 %s411_s27, 4  ;;  %s412_s9 = smov [#allocation8]   ;;  %s35_s28 = int_to_ptr.vmem [resolvable:$true] %s34_s28 }
   0x5   :  { %37 = dma.hbm_to_vmem [thread:$0]  %s33_s26, 64, %s35_s28, [#allocation6]  }
   0x6   :  { %s55_s10 = sshll.u32 %s412_s9, 4  ;;  %s413_s11 = smov 64   ;;  %s56_s10 = int_to_ptr.vmem [resolvable:$true] %s55_s10 }
   0x7   :  { %s414_s12 = smov 4   ;;  %s21_s1 = sshll.u32 %s483_s0, 4  ;;  %s22_s1 = int_to_ptr.hbm [resolvable:$true] %s21_s1 }
   0x8   :  { %61 = dma.hbm_to_vmem [thread:$0]  %s54_s8, 256, %s56_s10, [#allocation9], %s413_s11, %s413_s11, %s414_s12  }
   0x9   :  { %s415_s15 = smov [#allocation2]   ;;  %s43_s3 = sshll.u32 %s485_s2, 4  ;;  %s44_s3 = int_to_ptr.hbm [resolvable:$true] %s43_s3 }
   0xa   :  { %s23_s16 = sshll.u32 %s415_s15, 4  ;;  %s416_s19 = smov [#allocation7]   ;;  %s24_s16 = int_to_ptr.vmem [resolvable:$true] %s23_s16 }
   0xb   :  { %26 = dma.hbm_to_vmem [thread:$0]  %s22_s1, 32, %s24_s16, [#allocation3]  }
   0xc   :  { %s45_s20 = sshll.u32 %s416_s19, 4  ;;  %s68_s23 = sshll.u32 %s488_s5, 4  ;;  %s46_s20 = int_to_ptr.vmem [resolvable:$true] %s45_s20  ;;  %s69_s23 = int_to_ptr.hbm [resolvable:$true] %s68_s23 }
   0xd   :  { %48 = dma.hbm_to_vmem [thread:$0]  %s44_s3, 16, %s46_s20, [#allocation6]  }
   0xe   :  { %s417_s0 = smov [#allocation10]  }
   0xf   :  { %s70_s24 = sshll.u32 %s417_s0, 4  ;;  %s71_s24 = int_to_ptr.vmem [resolvable:$true] %s70_s24 }
  0x10   :  { %76 = dma.hbm_to_vmem [thread:$0]  %s69_s23, 256, %s71_s24, [#allocation9], %s413_s11, %s413_s11, %s414_s12  }
  0x11   :  { %403 = dma.done.wait [#allocation3], 32  }
  0x12   :  { %404 = vsyncadd [#allocation3], 4294967264 }
  0x13   :  { %405 = dma.done.wait [#allocation6], 80  }
  0x14   :  { %406 = vsyncadd [#allocation6], 4294967216 }
  0x15   :  { %407 = dma.done.wait [#allocation9], 512  }
  0x16   :  { %408 = vsyncadd [#allocation9], 4294966784  ;;  %vm111_vm0 = vcmask 1043456   ;;  %v102_v0 = vld [vmem:[#allocation5] sm:$0xf]  ;;  %vm107_vm1 = vcmask 64512  }
  0x17   :  { %v100_v1 = vld [vmem:[#allocation2] sm:$0x3]  ;;  %v113_v2 = vsel %vm111_vm0, %v102_v0, 0  ;;  %v245_v4 = vld [vmem:[#allocation8 + $0x8] sm:$0xff]  ;;  %v244_v5 = vld [vmem:[#allocation8] sm:$0xff]  ;;  %vm150_vm2 = vcmask 261120  }
  0x18   :  { %v101_v3 = vpack.c.bf16 %v100_v1, %v100_v1  ;;  %122 = vmatpush.bf16.msra.mxu0 %v113_v2  ;;  %160 = vmatpush.bf16.msra.mxu1 %v245_v4  ;;  %v256_v6 = vld [vmem:[#allocation7] ss:$0 sm:$0xff]  ;;  %v246_v13 = vld [vmem:[#allocation10] sm:$0xff]  ;;  %v257_v14 = vld [vmem:[%s487_s4] ss:$0 sm:$0xff]  ;;  %s418_s27 = smov [#allocation11]  }
  0x19   :  { %v247_v12 = vld [vmem:[#allocation10 + $0x8] sm:$0xff]  ;;  %s211_s28 = sshll.u32 %s418_s27, 4  ;;  %s213_s8 = sshll.u32 %s490_s7, 4  ;;  %s212_s28 = int_to_ptr.vmem [resolvable:$true] %s211_s28  ;;  %s214_s8 = int_to_ptr.hbm [resolvable:$true] %s213_s8 }
  0x1a   :  { %198 = vmatpush.bf16.msra.mxu2 %v247_v12  ;;  %v258_v20 = vld [vmem:[%s489_s6] ss:$0 sm:$0xff] }
  0x1b   :  { %225 = vmatmul.msk.bf16.vlgmr.msra.gmra.mxu0 %vm107_vm1, %v101_v3 }
  0x1c   :  { %161 = vmatpush.bf16.msra.mxu1 %v244_v5 }
  0x1e   :  { %199 = vmatpush.bf16.msra.mxu2 %v246_v13 }
  0x98   :  { %v124_v7 = vpop.f32.mrf.mxu0 }
  0x99   :  { %v125_v8 = vadd.f32 %v256_v6, %v124_v7 }
  0x9b   :  { %v128_v9 = vmax.f32 %v125_v8, 0.0 }
  0x9d   :  { %v129_v10 = vpack.c.bf16 %v128_v9, %v128_v9 }
  0x9f   :  { %234 = vmatmul.msk.bf16.vlgmr.msra.gmra.mxu1 %vm150_vm2, %v129_v10 }
  0xa0   :  { %v126_v11 = vpop.f32.mrf.mxu0 }
 0x11c   :  { %v163_v15 = vpop.f32.mrf.mxu1 }
 0x11d   :  { %v164_v16 = vadd.f32 %v257_v14, %v163_v15 }
 0x11f   :  { %v167_v17 = vmax.f32 %v164_v16, 0.0 }
 0x121   :  { %v168_v18 = vpack.c.bf16 %v167_v17, %v167_v17 }
 0x123   :  { %243 = vmatmul.msk.bf16.vlgmr.msra.gmra.mxu2 %vm150_vm2, %v168_v18 }
 0x124   :  { %v165_v19 = vpop.f32.mrf.mxu1 }
 0x1a6   :  { %v201_v21 = vpop.f32.mrf.mxu2 }
 0x1a7   :  { %v202_v22 = vadd.f32 %v258_v20, %v201_v21 }
 0x1a9   :  { %205 = vst [vmem:[#allocation11] sm:$0x3] %v202_v22 }
 0x1aa   :  { %216 = dma.vmem_to_hbm [thread:$0]  %s212_s28, 32, %s214_s8, [#allocation4]  }
 0x1ae   :  { %v203_v23 = vpop.f32.mrf.mxu2 }
 0x1af   :  { %409 = dma.done.wait [#allocation4], 32  }
 0x1b0   :  { %410 = vsyncadd [#allocation4], 4294967264 }
 0x1b1   :  { %221 = vsyncpa [#allocation3], 1 }
 0x1b2   :  { %222 = vsyncpa [#allocation6], 1 }
 0x1b3   :  { %223 = vsyncpa [#allocation9], 1 }
 0x1b4   :  { %224 = vsyncpa [#allocation4], 1 }

</bundles_post_ra>
